<compile_context>
chip_gen: v7x
topology: tpu7x:2x2x1
jax: 0.10.0
libtpu: 0.0.40
codegen_flags: <defaults>
</compile_context>

<pallas_src>
import functools

import jax
import jax.numpy as jnp
from jax.experimental import pallas as pl
from jax.experimental.pallas import tpu as pltpu


# --------------------------------- kernel ---------------------------------

def _sobel_kernel(x_ref, o_ref, *, H, W):
    """x_ref, o_ref: (TB, S) with S = H*W; each row is one flattened image."""
    TB, S = x_ref.shape
    x = x_ref[...].astype(jnp.float32)

    # Flattened spatial index -> image-boundary masks (replication padding).
    s_idx = jax.lax.broadcasted_iota(jnp.int32, (TB, S), 1)
    col = jax.lax.rem(s_idx, W)
    first_col = col == 0
    last_col = col == (W - 1)
    first_row = s_idx < W
    last_row = s_idx >= (H - 1) * W

    # Replication-clamped neighbour fetches: pltpu.roll (XLU) + masked select.
    # Rolls are per-row (axis=1), so batch rows never mix.
    def left(v):    # v[i, max(j - 1, 0)]
        return jnp.where(first_col, v, pltpu.roll(v, 1, axis=1))

    def right(v):   # v[i, min(j + 1, W - 1)]
        return jnp.where(last_col, v, pltpu.roll(v, S - 1, axis=1))

    def up(v):      # v[max(i - 1, 0), j]
        return jnp.where(first_row, v, pltpu.roll(v, W, axis=1))

    def down(v):    # v[min(i + 1, H - 1), j]
        return jnp.where(last_row, v, pltpu.roll(v, S - W, axis=1))

    # Separable Sobel (cross-correlation, matching torch.nn.Conv2d):
    xu = up(x)
    xd = down(x)
    a = xu + 2.0 * x + xd               # vertical [1, 2, 1]  blur  (for Gx)
    b = xu - xd                         # vertical [1, 0, -1] diff  (for Gy)

    gx = left(a) - right(a)             # horizontal [1, 0, -1]
    gy = left(b) + 2.0 * b + right(b)   # horizontal [1, 2, 1]

    o_ref[...] = jnp.sqrt(gx * gx + gy * gy).astype(o_ref.dtype)


# -------------------------------- wrapper ----------------------------------

@jax.jit
def sobel_conv(img):
    """SobelConv.forward: img (B, 1, H, W) -> (B, 1, H, W)."""
    B, C, H, W = img.shape
    assert C == 1, "SobelConv is defined for single-channel input"
    S = H * W

    # Fold the spatial dims onto the 128-lane axis (lane-dense layout).
    x2 = img.reshape(B, S)

    # Batch tile: full array (<=8) or full sublane tiles. Rows are independent
    # images, so the batch grid needs no halo.
    # TODO(synk): tile S with a one-row (W-element) halo per tile once H*W no
    # longer fits comfortably in VMEM (production image sizes).
    TB = B if B <= 8 else 8
    grid = (pl.cdiv(B, TB),)

    out2 = pl.pallas_call(
        functools.partial(_sobel_kernel, H=H, W=W),
        out_shape=jax.ShapeDtypeStruct((B, S), img.dtype),
        grid_spec=pltpu.PrefetchScalarGridSpec(
            num_scalar_prefetch=0,
            grid=grid,
            in_specs=[pl.BlockSpec((TB, S), lambda b: (b, 0))],
            out_specs=pl.BlockSpec((TB, S), lambda b: (b, 0)),
        ),
        compiler_params=pltpu.CompilerParams(
            dimension_semantics=("parallel",),
            vmem_limit_bytes=32 * 1024 * 1024,
        ),
    )(x2)

    return out2.reshape(B, 1, H, W)


# ------------------------- pure-JAX reference check -------------------------

def _reference(img):
    B, C, H, W = img.shape
    x = jnp.pad(img[:, 0].astype(jnp.float32), ((0, 0), (1, 1), (1, 1)),
                mode="edge")
    Gx = ((1.0, 0.0, -1.0), (2.0, 0.0, -2.0), (1.0, 0.0, -1.0))
    Gy = ((1.0, 2.0, 1.0), (0.0, 0.0, 0.0), (-1.0, -2.0, -1.0))
    gx = jnp.zeros((B, H, W), jnp.float32)
    gy = jnp.zeros((B, H, W), jnp.float32)
    for u in range(3):
        for v in range(3):
            win = x[:, u:u + H, v:v + W]
            gx = gx + Gx[u][v] * win
            gy = gy + Gy[u][v] * win
    return jnp.sqrt(gx * gx + gy * gy)[:, None].astype(img.dtype)


if __name__ == "__main__":
    key = jax.random.PRNGKey(0)
    B, C, H, W = 2, 1, 16, 16
    img = jax.random.uniform(key, (B, C, H, W), dtype=jnp.float32)

    out = sobel_conv(img)
    out = jax.block_until_ready(out)

    ref = _reference(img)
    assert out.shape == (B, 1, H, W), out.shape
    assert jnp.allclose(out, ref, rtol=1e-4, atol=1e-5), (
        float(jnp.max(jnp.abs(out - ref)))
    )
    print("KERNEL_OK")
</pallas_src>

<mosaic_0001>
module attributes {stable_mosaic.version = 11 : i64} {
  func.func @_sobel_kernel(%arg0: i32, %arg1: memref<2x256xf32, #tpu.memory_space<vmem>>, %arg2: memref<2x256xf32, #tpu.memory_space<vmem>>) attributes {dimension_semantics = [#tpu.dimension_semantics<parallel>], iteration_bounds = array<i64: 1>, scalar_prefetch = 0 : i64, scratch_operands = 0 : i64, tpu.core_type = #tpu.core_type<tc>, window_params = [{transform_indices = @transform_0, window_bounds = array<i64: 2, 256>}, {transform_indices = @transform_1, window_bounds = array<i64: 2, 256>}]} {
    %c0 = arith.constant 0 : index
    %c0_0 = arith.constant 0 : index
    %0 = vector.load %arg1[%c0, %c0_0] : memref<2x256xf32, #tpu.memory_space<vmem>>, vector<2x256xf32>
    %1 = tpu.iota {dimensions = array<i32: 1>} : vector<2x256xi32>
    %c16_i32 = arith.constant 16 : i32
    %2 = vector.broadcast %c16_i32 : i32 to vector<2x256xi32>
    %3 = arith.remsi %1, %2 : vector<2x256xi32>
    %c0_i32 = arith.constant 0 : i32
    %4 = vector.broadcast %c0_i32 : i32 to vector<2x256xi32>
    %5 = arith.cmpi eq, %3, %4 : vector<2x256xi32>
    %c15_i32 = arith.constant 15 : i32
    %6 = vector.broadcast %c15_i32 : i32 to vector<2x256xi32>
    %7 = arith.cmpi eq, %3, %6 : vector<2x256xi32>
    %c16_i32_1 = arith.constant 16 : i32
    %8 = vector.broadcast %c16_i32_1 : i32 to vector<2x256xi32>
    %9 = arith.cmpi slt, %1, %8 : vector<2x256xi32>
    %c240_i32 = arith.constant 240 : i32
    %10 = vector.broadcast %c240_i32 : i32 to vector<2x256xi32>
    %11 = arith.cmpi sge, %1, %10 : vector<2x256xi32>
    %c16_i32_2 = arith.constant 16 : i32
    %12 = tpu.dynamic_rotate %0 by %c16_i32_2 dim 1 : vector<2x256xf32>, i32 -> vector<2x256xf32>
    %13 = arith.select %9, %0, %12 : vector<2x256xi1>, vector<2x256xf32>
    %c240_i32_3 = arith.constant 240 : i32
    %14 = tpu.dynamic_rotate %0 by %c240_i32_3 dim 1 : vector<2x256xf32>, i32 -> vector<2x256xf32>
    %15 = arith.select %11, %0, %14 : vector<2x256xi1>, vector<2x256xf32>
    %cst = arith.constant 2.000000e+00 : f32
    %16 = vector.broadcast %cst : f32 to vector<2x256xf32>
    %17 = arith.mulf %16, %0 : vector<2x256xf32>
    %18 = arith.addf %13, %17 : vector<2x256xf32>
    %19 = arith.addf %18, %15 : vector<2x256xf32>
    %20 = arith.subf %13, %15 : vector<2x256xf32>
    %c1_i32 = arith.constant 1 : i32
    %21 = tpu.dynamic_rotate %19 by %c1_i32 dim 1 : vector<2x256xf32>, i32 -> vector<2x256xf32>
    %22 = arith.select %5, %19, %21 : vector<2x256xi1>, vector<2x256xf32>
    %c255_i32 = arith.constant 255 : i32
    %23 = tpu.dynamic_rotate %19 by %c255_i32 dim 1 : vector<2x256xf32>, i32 -> vector<2x256xf32>
    %24 = arith.select %7, %19, %23 : vector<2x256xi1>, vector<2x256xf32>
    %25 = arith.subf %22, %24 : vector<2x256xf32>
    %c1_i32_4 = arith.constant 1 : i32
    %26 = tpu.dynamic_rotate %20 by %c1_i32_4 dim 1 : vector<2x256xf32>, i32 -> vector<2x256xf32>
    %27 = arith.select %5, %20, %26 : vector<2x256xi1>, vector<2x256xf32>
    %cst_5 = arith.constant 2.000000e+00 : f32
    %28 = vector.broadcast %cst_5 : f32 to vector<2x256xf32>
    %29 = arith.mulf %28, %20 : vector<2x256xf32>
    %30 = arith.addf %27, %29 : vector<2x256xf32>
    %c255_i32_6 = arith.constant 255 : i32
    %31 = tpu.dynamic_rotate %20 by %c255_i32_6 dim 1 : vector<2x256xf32>, i32 -> vector<2x256xf32>
    %32 = arith.select %7, %20, %31 : vector<2x256xi1>, vector<2x256xf32>
    %33 = arith.addf %30, %32 : vector<2x256xf32>
    %34 = arith.mulf %25, %25 : vector<2x256xf32>
    %35 = arith.mulf %33, %33 : vector<2x256xf32>
    %36 = arith.addf %34, %35 : vector<2x256xf32>
    %37 = math.sqrt %36 : vector<2x256xf32>
    %c0_7 = arith.constant 0 : index
    %c0_8 = arith.constant 0 : index
    %38 = vector.load %arg2[%c0_7, %c0_8] : memref<2x256xf32, #tpu.memory_space<vmem>>, vector<2x256xf32>
    tpu.vector_store %arg2[%c0_7, %c0_8], %37 {strides = array<i32>} : memref<2x256xf32, #tpu.memory_space<vmem>>, vector<2x256xf32>,
    return
  }
  func.func @transform_0(%arg0: i32) -> (i32, i32) {
    %c0_i32 = arith.constant 0 : i32
    %c0_i32_0 = arith.constant 0 : i32
    return %arg0, %c0_i32 : i32, i32
  }
  func.func @transform_1(%arg0: i32) -> (i32, i32) {
    %c0_i32 = arith.constant 0 : i32
    %c0_i32_0 = arith.constant 0 : i32
    return %arg0, %c0_i32 : i32, i32
  }
}

</mosaic_0001>

<bundles_post_ra>
// kernel: sobel_conv.1
= control target key start
LH: loop header
LB: loop body
LE: loop exit
PB: predicated region body
PF: predicated region fallthrough
CT: control target
= control target key end

     0   :  { %v9_v0 = vlaneseq  ;;  %v168_v1 = vmov 1983009808   ;;  %s169_s8 = smov 112   ;;  %s170_s9 = smov 16   ;;  %s237_s0 = inlined_call_operand.vmem [shape: f32[2,256], index: 0, kind: input, shape index: {}]   ;;  %s238_s1 = inlined_call_operand.vmem [shape: f32[2,256], index: 1, kind: output, shape index: {}]  }
   0x1   :  { %v36_v2 = vunpack.c.l.s4 %v168_v1  ;;  %v8_v3 = vld [vmem:[%s237_s0] sm:$0xf]  ;;  %s171_s0 = smov 1   ;;  %s172_s10 = smov 127  }
   0x2   :  { %v39_v4 = vshrl.u32 %v9_v0, 7  ;;  %v62_v6 = vmul.f32 2.0, %v8_v3  ;;  %v186_v11 = vand.u32 127, %v9_v0 }
   0x3   :  { %v37_v5 = vunpack.c.0.s8 %v36_v2 }
   0x4   :  { %v11_v12 = vadd.s32 128, %v186_v11  ;;  %vm57_vm0 = vcmp.lt.s32.totalorder %v186_v11, 112  ;;  %vm30_vm1 = vcmp.lt.s32.totalorder %v186_v11, 16  ;;  %v16_v32 = vand.u32 15, %v186_v11 }
   0x5   :  { %v40_v7 = vsub.s32 %v37_v5, %v39_v4  ;;  %vm84_vm3 = vcmp.lt.s32.totalorder %v186_v11, 1  ;;  %vm93_vm6 = vcmp.lt.s32.totalorder %v186_v11, 127 }
   0x6   :  { %vm33_vm2 = vcmp.ge.s32.totalorder %v11_v12, 240  ;;  %v23_v33 = vand.u32 15, %v11_v12  ;;  %vm193_vm4 = vcmp.eq.s32.totalorder %v16_v32, 0  ;;  %vm202_vm7 = vcmp.eq.s32.totalorder %v16_v32, 15 }
   0x7   :  { %v41_v8 = vrot.slane %v8_v3, %v40_v7  ;;  %v70_v9 = vrot.slane %v62_v6, %v40_v7 }
   0x8   :  { %vm197_vm5 = vcmp.eq.s32.totalorder %v23_v33, 0  ;;  %vm206_vm8 = vcmp.eq.s32.totalorder %v23_v33, 15 }
   0x9   :  { %53 = vrot.lane.b32.xlu1 %v41_v8, %s169_s8  ;;  %45 = vrot.lane.b32.xlu0 %v41_v8, %s170_s9  ;;  %v42_v10 = vcombine.high %v41_v8, %v41_v8  ;;  %v71_v15 = vcombine.high %v70_v9, %v70_v9 }
   0xd   :  { %55 = vrot.lane.b32.xlu1 %v42_v10, %s169_s8  ;;  %47 = vrot.lane.b32.xlu0 %v42_v10, %s170_s9 }
  0x7b   :  { %v54_v13 = vpop.permute.xlu1 %53  ;;  %v46_v14 = vpop.permute.xlu0 %45 }
  0x7f   :  { %v56_v16 = vpop.permute.xlu1 %55  ;;  %v48_v17 = vpop.permute.xlu0 %47 }
  0x80   :  { %v58_v18 = vsel %vm57_vm0, %v54_v13, %v56_v16  ;;  %v59_v19 = vsel %vm57_vm0, %v56_v16, %v54_v13  ;;  %v49_v20 = vsel %vm30_vm1, %v46_v14, %v48_v17  ;;  %v50_v21 = vsel %vm30_vm1, %v48_v17, %v46_v14 }
  0x81   :  { %v61_v22 = vsel %vm33_vm2, %v42_v10, %v59_v19  ;;  %v51_v23 = vsel %vm30_vm1, %v41_v8, %v50_v21  ;;  %v75_v25 = vadd.f32 %v71_v15, %v49_v20 }
  0x82   :  { %v74_v24 = vadd.f32 %v70_v9, %v51_v23  ;;  %v78_v26 = vsub.f32 %v51_v23, %v58_v18  ;;  %v79_v27 = vsub.f32 %v49_v20, %v61_v22 }
  0x83   :  { %v77_v29 = vadd.f32 %v75_v25, %v61_v22 }
  0x84   :  { %100 = vrot.lane.b32.xlu0 %v78_v26, %s171_s0  ;;  %102 = vrot.lane.b32.xlu1 %v79_v27, %s171_s0  ;;  %v76_v28 = vadd.f32 %v74_v24, %v58_v18  ;;  %v108_v50 = vmul.f32 2.0, %v78_v26  ;;  %v109_v51 = vmul.f32 2.0, %v79_v27 }
  0x88   :  { %80 = vrot.lane.b32.xlu0 %v76_v28, %s171_s0  ;;  %82 = vrot.lane.b32.xlu1 %v77_v29, %s171_s0 }
  0x8c   :  { %89 = vrot.lane.b32.xlu0 %v76_v28, %s172_s10  ;;  %91 = vrot.lane.b32.xlu1 %v77_v29, %s172_s10 }
  0x90   :  { %112 = vrot.lane.b32.xlu0 %v78_v26, %s172_s10  ;;  %114 = vrot.lane.b32.xlu1 %v79_v27, %s172_s10 }
  0xf6   :  { %v101_v30 = vpop.permute.xlu0 %100  ;;  %v103_v31 = vpop.permute.xlu1 %102 }
  0xf7   :  { %v104_v38 = vsel %vm84_vm3, %v101_v30, %v103_v31  ;;  %v105_v39 = vsel %vm84_vm3, %v103_v31, %v101_v30 }
  0xf8   :  { %v106_v42 = vsel %vm193_vm4, %v78_v26, %v105_v39  ;;  %v107_v43 = vsel %vm197_vm5, %v79_v27, %v104_v38 }
  0xf9   :  { %v110_v54 = vadd.f32 %v108_v50, %v106_v42  ;;  %v111_v55 = vadd.f32 %v109_v51, %v107_v43 }
  0xfa   :  { %v81_v34 = vpop.permute.xlu0 %80  ;;  %v83_v35 = vpop.permute.xlu1 %82 }
  0xfb   :  { %v85_v46 = vsel %vm84_vm3, %v81_v34, %v83_v35  ;;  %v86_v47 = vsel %vm84_vm3, %v83_v35, %v81_v34 }
  0xfc   :  { %v87_v56 = vsel %vm193_vm4, %v76_v28, %v86_v47  ;;  %v88_v57 = vsel %vm197_vm5, %v77_v29, %v85_v46 }
  0xfe   :  { %v90_v44 = vpop.permute.xlu0 %89  ;;  %v92_v45 = vpop.permute.xlu1 %91 }
  0xff   :  { %v94_v48 = vsel %vm93_vm6, %v90_v44, %v92_v45  ;;  %v95_v49 = vsel %vm93_vm6, %v92_v45, %v90_v44 }
 0x100   :  { %v96_v52 = vsel %vm202_vm7, %v76_v28, %v94_v48  ;;  %v97_v53 = vsel %vm206_vm8, %v77_v29, %v95_v49 }
 0x101   :  { %v98_v60 = vsub.f32 %v87_v56, %v96_v52  ;;  %v99_v61 = vsub.f32 %v88_v57, %v97_v53 }
 0x102   :  { %v113_v58 = vpop.permute.xlu0 %112  ;;  %v115_v59 = vpop.permute.xlu1 %114 }
 0x103   :  { %v116_v62 = vsel %vm93_vm6, %v113_v58, %v115_v59  ;;  %v117_v63 = vsel %vm93_vm6, %v115_v59, %v113_v58  ;;  %v122_v4 = vmul.f32 %v98_v60, %v98_v60  ;;  %v123_v5 = vmul.f32 %v99_v61, %v99_v61 }
 0x104   :  { %v118_v0 = vsel %vm202_vm7, %v78_v26, %v116_v62  ;;  %v119_v1 = vsel %vm206_vm8, %v79_v27, %v117_v63 }
 0x105   :  { %v120_v2 = vadd.f32 %v118_v0, %v110_v54  ;;  %v121_v3 = vadd.f32 %v119_v1, %v111_v55 }
 0x107   :  { %v124_v6 = vmul.f32 %v120_v2, %v120_v2  ;;  %v125_v7 = vmul.f32 %v121_v3, %v121_v3 }
 0x109   :  { %v126_v8 = vadd.f32 %v124_v6, %v122_v4  ;;  %v127_v9 = vadd.f32 %v125_v7, %v123_v5 }
 0x10b   :  { %164 = vrsqrt.f32 %v126_v8  ;;  %vm130_vm9 = vcmp.eq.f32.partialorder %v126_v8, inf  ;;  %v133_v13 = vand.u32 2147483648, %v126_v8  ;;  %vm132_vm10 = vcmp.eq.f32.partialorder %v126_v8, 0.0 }
 0x10c   :  { %166 = vrsqrt.f32 %v127_v9  ;;  %vm137_vm11 = vcmp.eq.f32.partialorder %v127_v9, inf  ;;  %v140_v16 = vand.u32 2147483648, %v127_v9  ;;  %vm139_vm12 = vcmp.eq.f32.partialorder %v127_v9, 0.0 }
 0x115   :  { %v165_v10 = vpop.eup %164 }
 0x116   :  { %v167_v12 = vpop.eup %166  ;;  %v129_v11 = vmul.f32 %v165_v10, %v126_v8 }
 0x117   :  { %v136_v14 = vmul.f32 %v167_v12, %v127_v9 }
 0x118   :  { %v131_v15 = vsel %vm130_vm9, %v126_v8, %v129_v11 }
 0x119   :  { %v134_v17 = vsel %vm132_vm10, %v133_v13, %v131_v15  ;;  %v138_v18 = vsel %vm137_vm11, %v127_v9, %v136_v14 }
 0x11a   :  { %v141_v19 = vsel %vm139_vm12, %v140_v16, %v138_v18 }
 0x11b   :  { %v144_v20 = vcombine.low %v134_v17, %v141_v19 }
 0x11d   :  { %158 = vst.sshfl [vmem:[%s238_s1] sm:$0x33 pattern:$0x76325410] %v144_v20 }

</bundles_post_ra>
